<compile_context>
chip_gen: v6e
topology: v6e:2x2x1
jax: 0.10.0
libtpu: 0.0.40
codegen_flags: <defaults>
</compile_context>

<pallas_src>
import jax
import jax.numpy as jnp
from jax.experimental import pallas as pl
from jax.experimental.pallas import tpu as pltpu


def _copy_kernel(x_ref, o_ref):
    # Pure VMEM pass-through (streaming copy).
    o_ref[...] = x_ref[...]


def _sublane_multiple(dtype) -> int:
    # Packed sublane tile: 8 rows for 4-byte dtypes, 16 for 2-byte, 32 for 1-byte.
    itemsize = jnp.dtype(dtype).itemsize
    return max(8, 8 * (4 // max(itemsize, 1)))


# Lane widths tried for the free-reshape fast path (largest first: fewer,
# larger unmasked stores / DMA transactions).
_LANE_CANDIDATES = (4096, 2048, 1024, 512, 256, 128)
# ~4 MiB per tile  ->  2 in-bufs + 2 out-bufs = ~16 MiB double-buffered,
# well under v7x's 64 MiB physical VMEM and our explicit scoped limit.
_TILE_BYTES_TARGET = 4 * 1024 * 1024
# Above v5e's 16 MiB default scoped VMEM limit; fine on v6e/v7x too.
_VMEM_LIMIT_BYTES = 32 * 1024 * 1024


def _identity_copy_2d(slab):
    """Streaming identity copy of a (rows, lane) slab; rows % sublane == 0."""
    rows, lane = slab.shape
    itemsize = jnp.dtype(slab.dtype).itemsize
    sub = _sublane_multiple(slab.dtype)

    # VMEM-budget-based row block, kept a multiple of the packed sublane tile.
    budget_rows = max((_TILE_BYTES_TARGET // (lane * itemsize)) // sub * sub, sub)
    block_rows = min(budget_rows, rows)
    if rows >= 2 * sub:
        # Keep >=2 grid steps so the parallel axis can shard across v7x's 2 TCs.
        half_rows = (-(-rows // 2) + sub - 1) // sub * sub
        block_rows = min(block_rows, half_rows)
    block_rows = max(sub, (block_rows // sub) * sub)

    grid = pl.cdiv(rows, block_rows)  # partial last block handled by Pallas

    return pl.pallas_call(
        _copy_kernel,
        out_shape=jax.ShapeDtypeStruct((rows, lane), slab.dtype),
        grid_spec=pltpu.PrefetchScalarGridSpec(
            num_scalar_prefetch=0,
            grid=(grid,),
            in_specs=[pl.BlockSpec((block_rows, lane), lambda i: (i, 0))],
            out_specs=pl.BlockSpec((block_rows, lane), lambda i: (i, 0)),
        ),
        compiler_params=pltpu.CompilerParams(
            dimension_semantics=("parallel",),
            vmem_limit_bytes=_VMEM_LIMIT_BYTES,
        ),
    )(slab)


class Features:
    """JAX/Pallas mirror of the PyTorch `Features` base class."""

    def __init__(self):
        self.feature_size = -1

    def __call__(self, x):
        return self.forward(x)

    def forward(self, x):
        # Base-class forward is abstract in PyTorch; here we realize the only
        # well-defined semantics (identity feature pass-through) as a Pallas
        # streaming-copy kernel.
        shape = x.shape
        total = int(x.size)
        if total == 0:
            return x

        sub = _sublane_multiple(x.dtype)

        # ---- Fast path: free reshape to a lane-dense slab, no pad/slice ----
        lane = None
        for cand in _LANE_CANDIDATES:
            if total % cand == 0 and (total // cand) % sub == 0:
                lane = cand
                break

        if lane is not None:
            slab = x.reshape(total // lane, lane)        # bitcast, no HBM traffic
            out = _identity_copy_2d(slab)
            return out.reshape(shape)

        # ---- Ragged fallback (rare): one pad in, one slice out ----
        # TODO(synk): handle the tail row with an in-kernel masked store to
        # avoid even this pad/slice HBM traffic.
        lane = 128
        rows = -(-total // lane)
        rows_p = ((rows + sub - 1) // sub) * sub
        flat = jnp.pad(x.reshape(-1), (0, rows_p * lane - total))
        out = _identity_copy_2d(flat.reshape(rows_p, lane))
        return out.reshape(-1)[:total].reshape(shape)

    def param_groups(self, start_lr, feature_mult=1):
        # No trainable parameters in the base class.
        return [{"params": [], "lr": start_lr * feature_mult}]

    # load_model (checkpoint loading) is a host-side utility with no device
    # compute; intentionally not implemented here.


if __name__ == "__main__":
    key = jax.random.PRNGKey(0)
    x = jax.random.normal(key, (2, 4, 16, 16), dtype=jnp.float32)  # NCHW

    model = Features()
    y = model(x)
    y = jax.block_until_ready(y)

    assert y.shape == x.shape and y.dtype == x.dtype
    assert bool(jnp.all(y == x))
    print("KERNEL_OK")
</pallas_src>

<mosaic_0001>
module attributes {stable_mosaic.version = 11 : i64} {
  func.func @_copy_kernel(%arg0: i32, %arg1: memref<8x256xf32, #tpu.memory_space<vmem>>, %arg2: memref<8x256xf32, #tpu.memory_space<vmem>>) attributes {dimension_semantics = [#tpu.dimension_semantics<parallel>], iteration_bounds = array<i64: 1>, scalar_prefetch = 0 : i64, scratch_operands = 0 : i64, tpu.core_type = #tpu.core_type<tc>, window_params = [{transform_indices = @transform_0, window_bounds = array<i64: 8, 256>}, {transform_indices = @transform_1, window_bounds = array<i64: 8, 256>}]} {
    %c0 = arith.constant 0 : index
    %c0_0 = arith.constant 0 : index
    %0 = vector.load %arg1[%c0, %c0_0] : memref<8x256xf32, #tpu.memory_space<vmem>>, vector<8x256xf32>
    %c0_1 = arith.constant 0 : index
    %c0_2 = arith.constant 0 : index
    %1 = vector.load %arg2[%c0_1, %c0_2] : memref<8x256xf32, #tpu.memory_space<vmem>>, vector<8x256xf32>
    tpu.vector_store %arg2[%c0_1, %c0_2], %0 {strides = array<i32>} : memref<8x256xf32, #tpu.memory_space<vmem>>, vector<8x256xf32>,
    return
  }
  func.func @transform_0(%arg0: i32) -> (i32, i32) {
    %c0_i32 = arith.constant 0 : i32
    %c0_i32_0 = arith.constant 0 : i32
    return %arg0, %c0_i32 : i32, i32
  }
  func.func @transform_1(%arg0: i32) -> (i32, i32) {
    %c0_i32 = arith.constant 0 : i32
    %c0_i32_0 = arith.constant 0 : i32
    return %arg0, %c0_i32 : i32, i32
  }
}

</mosaic_0001>

<bundles_post_ra>
// kernel: tpu_custom_call.1
= control target key start
LH: loop header
LB: loop body
LE: loop exit
PB: predicated region body
PF: predicated region fallthrough
CT: control target
= control target key end

     0   :  { %6 = vsyncpa [#allocation3], 0  ;;  %s104_s0 = inlined_call_operand.hbm [shape: f32[8,256], index: 0, kind: input, shape index: {}]   ;;  %s105_s1 = inlined_call_operand.hbm [shape: f32[8,256], index: 1, kind: output, shape index: {}]  }
   0x1   :  { %7 = vsyncpa [#allocation4], 0  ;;  %s86_s6 = smov [#allocation2]  }
   0x2   :  { %s14_s7 = sshll.u32 %s86_s6, 4  ;;  %s15_s7 = int_to_ptr.vmem [resolvable:$true] %s14_s7 }
   0x3   :  { %s50_s8 = scalar_lea.vmem %s15_s7, 256  ;;  %p55_p1 = scmp.lt.s32.totalorder %s15_s7, %s15_s7 }
   0x4   :  { %p51_p0 = scmp.ne.s32.totalorder %s15_s7, %s50_s8  ;;  %p56_p2 = scmp.lt.s32.totalorder %s50_s8, %s50_s8 }
   0x6   :  { %p57_p3 = por %p56_p2, %p55_p1 }
   0x8   :  { %p58_p4 = pnand %p57_p3, %p51_p0 }
   0xa   :  { %61 = shalt.err (!%p58_p4)
}
   0xb   :  { %17 = dma.hbm_to_vmem [thread:$0]  %s104_s0, 256, %s15_s7, [#allocation3]  }
   0xc   :  { %82 = dma.done.wait [#allocation3], 256  }
   0xd   :  { %83 = vsyncadd [#allocation3], 4294967040  ;;  %s87_s11 = smov [#allocation5]   ;;  %v21_v0 = vld [vmem:[#allocation2] sm:$0xff]  ;;  %v22_v1 = vld [vmem:[#allocation2 + $0x8] sm:$0xff] }
   0xe   :  { %s31_s12 = sshll.u32 %s87_s11, 4  ;;  %23 = vst [vmem:[#allocation5] sm:$0xff] %v21_v0  ;;  %24 = vst [vmem:[#allocation5 + $0x8] sm:$0xff] %v22_v1  ;;  %s32_s12 = int_to_ptr.vmem [resolvable:$true] %s31_s12 }
   0xf   :  { %s62_s13 = scalar_lea.vmem %s32_s12, 256  ;;  %p67_p6 = scmp.lt.s32.totalorder %s32_s12, %s32_s12 }
  0x10   :  { %p63_p5 = scmp.ne.s32.totalorder %s32_s12, %s62_s13  ;;  %p68_p7 = scmp.lt.s32.totalorder %s62_s13, %s62_s13 }
  0x12   :  { %p69_p8 = por %p68_p7, %p67_p6 }
  0x14   :  { %p70_p9 = pnand %p69_p8, %p63_p5 }
  0x16   :  { %73 = shalt.err (!%p70_p9)
}
  0x17   :  { %34 = dma.vmem_to_hbm [thread:$0]  %s32_s12, 256, %s105_s1, [#allocation4]  }
  0x18   :  { %84 = dma.done.wait [#allocation4], 256  }
  0x19   :  { %85 = vsyncadd [#allocation4], 4294967040 }
  0x1a   :  { %38 = vsyncpa [#allocation3], 1 }
  0x1b   :  { %39 = vsyncpa [#allocation4], 1 }

</bundles_post_ra>
